<compile_context>
chip_gen: v7x
topology: tpu7x:2x2x1
jax: 0.10.0
libtpu: 0.0.40
codegen_flags: <defaults>
</compile_context>

<pallas_src>
import functools

import jax
import jax.numpy as jnp
from jax.experimental import pallas as pl
from jax.experimental.pallas import tpu as pltpu


def _round_up(a, b):
    return ((a + b - 1) // b) * b


# --------------------------------------------------------------------------
# Pallas kernel: fused im2col (VMEM scratch) + single MXU matmul + bias + ReLU
# --------------------------------------------------------------------------
def _conv_kernel(x_ref, w_ref, b_ref, o_ref, patch_ref, *, k, c_in, h_pad):
    # x_ref:     (B, Hp_in, Wp*C_in)    zero-padded NHWC rows, flat per h
    # w_ref:     (k*k*W*C_in, N_pad)    block-diagonal expanded conv weight
    # b_ref:     (1, N_pad)             bias tiled across spatial width
    # o_ref:     (B*H_pad, N_pad)       lane-dense output slab
    # patch_ref: (B*H_pad, k*k*W*C_in)  VMEM scratch for the patch matrix
    n_b = x_ref.shape[0]
    n_taps = k * k
    wk = w_ref.shape[0] // n_taps            # W * C_in

    # Stage the im2col patch matrix in VMEM.  Outer-dw / inner-dh: the
    # lane-unaligned slice at dw*c_in happens once per dw; the inner dh loop
    # only slices sublanes of the already-shifted slab.
    for b in range(n_b):
        for dw in range(k):
            shifted = x_ref[b, :, dw * c_in: dw * c_in + wk]     # (Hp_in, wk)
            for dh in range(k):
                tap = dh * k + dw
                patch_ref[b * h_pad:(b + 1) * h_pad,
                          tap * wk:(tap + 1) * wk] = shifted[dh:dh + h_pad, :]

    # One MXU matmul instead of 9 accumulated taps.
    acc = jnp.dot(patch_ref[...], w_ref[...],
                  preferred_element_type=jnp.float32)
    acc = acc + b_ref[...]
    o_ref[...] = jnp.maximum(acc, 0.0).astype(o_ref.dtype)


# --------------------------------------------------------------------------
# One-time weight/bias packing (hoisted out of the per-call forward path)
# --------------------------------------------------------------------------
def pack_conv_params(weight_oikk, bias, width):
    """Pack PyTorch-layout Conv2d params into the kernel's MXU layout.

    Returns:
      big_w:    [k*k*W*C_in, N_pad]  block-diagonal expanded weight
      bias_row: [1, N_pad]           bias tiled across spatial width
    """
    C_out, C_in, k, _ = weight_oikk.shape
    N = width * C_out
    N_pad = _round_up(max(N, 128), 128)
    # big_w[(dh*k+dw)*W*C_in + w*C_in + ci, v*C_out + co]
    #     = (w == v) * weight[co, ci, dh, dw]
    w_t = jnp.transpose(weight_oikk, (2, 3, 1, 0)).reshape(k * k, C_in, C_out)
    eye_w = jnp.eye(width, dtype=weight_oikk.dtype)
    big_w = jnp.einsum('wv,dio->dwivo', eye_w, w_t).reshape(k * k,
                                                            width * C_in, N)
    big_w = jnp.pad(big_w, ((0, 0), (0, 0), (0, N_pad - N)))
    big_w = big_w.reshape(k * k * width * C_in, N_pad)
    bias_row = jnp.pad(jnp.tile(bias, width), (0, N_pad - N)).reshape(1, N_pad)
    return big_w, bias_row


# --------------------------------------------------------------------------
# Forward: minimal layout plumbing + single pallas_call (no grid)
# --------------------------------------------------------------------------
@functools.partial(jax.jit, static_argnames=("k", "pad", "c_out"))
def model_forward(x_nchw, big_w, bias_row, *, k=3, pad=1, c_out=8):
    """Stand-in inner model forward: Conv2d(k, pad, stride=1) + ReLU.

    x_nchw: [B, C_in, H, W] (PyTorch NCHW); returns [B, C_out, H, W].
    """
    B, C_in, H, W = x_nchw.shape
    N = W * c_out
    N_pad = big_w.shape[1]
    H_pad = _round_up(H, 8)
    Hp_in = H_pad + (k - 1)
    Wp = W + 2 * pad

    # NCHW -> zero-padded NHWC rows (KiB-scale layout op).
    # TODO(synk): if the caller can supply NHWC directly, both transposes
    # around the pallas_call can be deleted.
    x_nhwc = jnp.transpose(x_nchw, (0, 2, 3, 1))
    xp = jnp.pad(x_nhwc, ((0, 0),
                          (pad, pad + (Hp_in - (H + 2 * pad))),
                          (pad, pad), (0, 0)))
    x_rows = xp.reshape(B, Hp_in, Wp * C_in)

    kernel = functools.partial(_conv_kernel, k=k, c_in=C_in, h_pad=H_pad)

    flops = 2 * (B * H_pad) * (k * k * W * C_in) * N_pad
    bytes_accessed = 4 * (B * Hp_in * Wp * C_in          # input rows
                          + k * k * W * C_in * N_pad     # packed weight
                          + N_pad                        # bias row
                          + B * H_pad * N_pad)           # output slab

    out2d = pl.pallas_call(
        kernel,
        out_shape=jax.ShapeDtypeStruct((B * H_pad, N_pad), jnp.float32),
        in_specs=[
            pl.BlockSpec(memory_space=pltpu.MemorySpace.VMEM),
            pl.BlockSpec(memory_space=pltpu.MemorySpace.VMEM),
            pl.BlockSpec(memory_space=pltpu.MemorySpace.VMEM),
        ],
        out_specs=pl.BlockSpec(memory_space=pltpu.MemorySpace.VMEM),
        scratch_shapes=[pltpu.VMEM((B * H_pad, k * k * W * C_in), jnp.float32)],
        cost_estimate=pl.CostEstimate(
            flops=flops, transcendentals=0, bytes_accessed=bytes_accessed),
    )(x_rows, big_w, bias_row)

    out_nhwc = out2d.reshape(B, H_pad, N_pad)[:, :H, :N].reshape(B, H, W, c_out)
    return jnp.transpose(out_nhwc, (0, 3, 1, 2))


# --------------------------------------------------------------------------
# Main
# --------------------------------------------------------------------------
if __name__ == "__main__":
    key = jax.random.PRNGKey(0)
    k_x, k_w, k_b = jax.random.split(key, 3)

    B, C_in, H, W = 2, 4, 16, 16
    C_out, K = 8, 3

    x = jax.random.normal(k_x, (B, C_in, H, W), dtype=jnp.float32)
    fan_in = C_in * K * K
    weight = (jax.random.normal(k_w, (C_out, C_in, K, K), dtype=jnp.float32)
              / jnp.sqrt(fan_in))
    bias = jax.random.normal(k_b, (C_out,), dtype=jnp.float32) * 0.01

    # One-time packing (out of the hot forward path).
    big_w, bias_row = pack_conv_params(weight, bias, W)
    big_w = jax.block_until_ready(big_w)

    y = model_forward(x, big_w, bias_row, k=K, pad=1, c_out=C_out)
    jax.block_until_ready(y)

    # Sanity check against a pure-JAX reference convolution + bias + ReLU.
    y_ref = jax.lax.conv_general_dilated(
        x, weight, window_strides=(1, 1), padding=((1, 1), (1, 1)),
        dimension_numbers=("NCHW", "OIHW", "NCHW"))
    y_ref = jnp.maximum(y_ref + bias[None, :, None, None], 0.0)

    assert y.shape == (B, C_out, H, W)
    assert jnp.allclose(y, y_ref, atol=5e-5, rtol=5e-5), "mismatch vs reference"

    print("KERNEL_OK")
</pallas_src>

<mosaic_0001>
module attributes {stable_mosaic.version = 11 : i64} {
  func.func @_conv_kernel(%arg0: memref<2x18x72xf32, #tpu.memory_space<vmem>>, %arg1: memref<576x128xf32, #tpu.memory_space<vmem>>, %arg2: memref<1x128xf32, #tpu.memory_space<vmem>>, %arg3: memref<32x128xf32, #tpu.memory_space<vmem>>, %arg4: memref<32x576xf32, #tpu.memory_space<vmem>>) attributes {dimension_semantics = [], scalar_prefetch = 0 : i64, scratch_operands = 1 : i64, tpu.core_type = #tpu.core_type<tc>} {
    %c0 = arith.constant 0 : index
    %c0_0 = arith.constant 0 : index
    %c0_1 = arith.constant 0 : index
    %0 = vector.load %arg0[%c0, %c0_0, %c0_1] : memref<2x18x72xf32, #tpu.memory_space<vmem>>, vector<1x18x64xf32>
    %1 = vector.shape_cast %0 : vector<1x18x64xf32> to vector<18x64xf32>
    %2 = vector.extract_strided_slice %1 {offsets = [0, 0], sizes = [16, 64], strides = [1, 1]} : vector<18x64xf32> to vector<16x64xf32>
    %c0_2 = arith.constant 0 : index
    %c0_3 = arith.constant 0 : index
    %3 = vector.load %arg4[%c0_2, %c0_3] : memref<32x576xf32, #tpu.memory_space<vmem>>, vector<16x64xf32>
    tpu.vector_store %arg4[%c0_2, %c0_3], %2 {strides = array<i32>} : memref<32x576xf32, #tpu.memory_space<vmem>>, vector<16x64xf32>,
    %4 = vector.extract_strided_slice %1 {offsets = [1, 0], sizes = [16, 64], strides = [1, 1]} : vector<18x64xf32> to vector<16x64xf32>
    %c0_4 = arith.constant 0 : index
    %c192 = arith.constant 192 : index
    %5 = vector.load %arg4[%c0_4, %c192] : memref<32x576xf32, #tpu.memory_space<vmem>>, vector<16x64xf32>
    tpu.vector_store %arg4[%c0_4, %c192], %4 {strides = array<i32>} : memref<32x576xf32, #tpu.memory_space<vmem>>, vector<16x64xf32>,
    %6 = vector.extract_strided_slice %1 {offsets = [2, 0], sizes = [16, 64], strides = [1, 1]} : vector<18x64xf32> to vector<16x64xf32>
    %c0_5 = arith.constant 0 : index
    %c384 = arith.constant 384 : index
    %7 = vector.load %arg4[%c0_5, %c384] : memref<32x576xf32, #tpu.memory_space<vmem>>, vector<16x64xf32>
    tpu.vector_store %arg4[%c0_5, %c384], %6 {strides = array<i32>} : memref<32x576xf32, #tpu.memory_space<vmem>>, vector<16x64xf32>,
    %c0_6 = arith.constant 0 : index
    %c0_7 = arith.constant 0 : index
    %c4 = arith.constant 4 : index
    %8 = vector.load %arg0[%c0_6, %c0_7, %c4] : memref<2x18x72xf32, #tpu.memory_space<vmem>>, vector<1x18x64xf32>
    %9 = vector.shape_cast %8 : vector<1x18x64xf32> to vector<18x64xf32>
    %10 = vector.extract_strided_slice %9 {offsets = [0, 0], sizes = [16, 64], strides = [1, 1]} : vector<18x64xf32> to vector<16x64xf32>
    %c0_8 = arith.constant 0 : index
    %c64 = arith.constant 64 : index
    %11 = vector.load %arg4[%c0_8, %c64] : memref<32x576xf32, #tpu.memory_space<vmem>>, vector<16x64xf32>
    tpu.vector_store %arg4[%c0_8, %c64], %10 {strides = array<i32>} : memref<32x576xf32, #tpu.memory_space<vmem>>, vector<16x64xf32>,
    %12 = vector.extract_strided_slice %9 {offsets = [1, 0], sizes = [16, 64], strides = [1, 1]} : vector<18x64xf32> to vector<16x64xf32>
    %c0_9 = arith.constant 0 : index
    %c256 = arith.constant 256 : index
    %13 = vector.load %arg4[%c0_9, %c256] : memref<32x576xf32, #tpu.memory_space<vmem>>, vector<16x64xf32>
    tpu.vector_store %arg4[%c0_9, %c256], %12 {strides = array<i32>} : memref<32x576xf32, #tpu.memory_space<vmem>>, vector<16x64xf32>,
    %14 = vector.extract_strided_slice %9 {offsets = [2, 0], sizes = [16, 64], strides = [1, 1]} : vector<18x64xf32> to vector<16x64xf32>
    %c0_10 = arith.constant 0 : index
    %c448 = arith.constant 448 : index
    %15 = vector.load %arg4[%c0_10, %c448] : memref<32x576xf32, #tpu.memory_space<vmem>>, vector<16x64xf32>
    tpu.vector_store %arg4[%c0_10, %c448], %14 {strides = array<i32>} : memref<32x576xf32, #tpu.memory_space<vmem>>, vector<16x64xf32>,
    %c0_11 = arith.constant 0 : index
    %c0_12 = arith.constant 0 : index
    %c8 = arith.constant 8 : index
    %16 = vector.load %arg0[%c0_11, %c0_12, %c8] : memref<2x18x72xf32, #tpu.memory_space<vmem>>, vector<1x18x64xf32>
    %17 = vector.shape_cast %16 : vector<1x18x64xf32> to vector<18x64xf32>
    %18 = vector.extract_strided_slice %17 {offsets = [0, 0], sizes = [16, 64], strides = [1, 1]} : vector<18x64xf32> to vector<16x64xf32>
    %c0_13 = arith.constant 0 : index
    %c128 = arith.constant 128 : index
    %19 = vector.load %arg4[%c0_13, %c128] : memref<32x576xf32, #tpu.memory_space<vmem>>, vector<16x64xf32>
    tpu.vector_store %arg4[%c0_13, %c128], %18 {strides = array<i32>} : memref<32x576xf32, #tpu.memory_space<vmem>>, vector<16x64xf32>,
    %20 = vector.extract_strided_slice %17 {offsets = [1, 0], sizes = [16, 64], strides = [1, 1]} : vector<18x64xf32> to vector<16x64xf32>
    %c0_14 = arith.constant 0 : index
    %c320 = arith.constant 320 : index
    %21 = vector.load %arg4[%c0_14, %c320] : memref<32x576xf32, #tpu.memory_space<vmem>>, vector<16x64xf32>
    tpu.vector_store %arg4[%c0_14, %c320], %20 {strides = array<i32>} : memref<32x576xf32, #tpu.memory_space<vmem>>, vector<16x64xf32>,
    %22 = vector.extract_strided_slice %17 {offsets = [2, 0], sizes = [16, 64], strides = [1, 1]} : vector<18x64xf32> to vector<16x64xf32>
    %c0_15 = arith.constant 0 : index
    %c512 = arith.constant 512 : index
    %23 = vector.load %arg4[%c0_15, %c512] : memref<32x576xf32, #tpu.memory_space<vmem>>, vector<16x64xf32>
    tpu.vector_store %arg4[%c0_15, %c512], %22 {strides = array<i32>} : memref<32x576xf32, #tpu.memory_space<vmem>>, vector<16x64xf32>,
    %c1 = arith.constant 1 : index
    %c0_16 = arith.constant 0 : index
    %c0_17 = arith.constant 0 : index
    %24 = vector.load %arg0[%c1, %c0_16, %c0_17] : memref<2x18x72xf32, #tpu.memory_space<vmem>>, vector<1x18x64xf32>
    %25 = vector.shape_cast %24 : vector<1x18x64xf32> to vector<18x64xf32>
    %26 = vector.extract_strided_slice %25 {offsets = [0, 0], sizes = [16, 64], strides = [1, 1]} : vector<18x64xf32> to vector<16x64xf32>
    %c16 = arith.constant 16 : index
    %c0_18 = arith.constant 0 : index
    %27 = vector.load %arg4[%c16, %c0_18] : memref<32x576xf32, #tpu.memory_space<vmem>>, vector<16x64xf32>
    tpu.vector_store %arg4[%c16, %c0_18], %26 {strides = array<i32>} : memref<32x576xf32, #tpu.memory_space<vmem>>, vector<16x64xf32>,
    %28 = vector.extract_strided_slice %25 {offsets = [1, 0], sizes = [16, 64], strides = [1, 1]} : vector<18x64xf32> to vector<16x64xf32>
    %c16_19 = arith.constant 16 : index
    %c192_20 = arith.constant 192 : index
    %29 = vector.load %arg4[%c16_19, %c192_20] : memref<32x576xf32, #tpu.memory_space<vmem>>, vector<16x64xf32>
    tpu.vector_store %arg4[%c16_19, %c192_20], %28 {strides = array<i32>} : memref<32x576xf32, #tpu.memory_space<vmem>>, vector<16x64xf32>,
    %30 = vector.extract_strided_slice %25 {offsets = [2, 0], sizes = [16, 64], strides = [1, 1]} : vector<18x64xf32> to vector<16x64xf32>
    %c16_21 = arith.constant 16 : index
    %c384_22 = arith.constant 384 : index
    %31 = vector.load %arg4[%c16_21, %c384_22] : memref<32x576xf32, #tpu.memory_space<vmem>>, vector<16x64xf32>
    tpu.vector_store %arg4[%c16_21, %c384_22], %30 {strides = array<i32>} : memref<32x576xf32, #tpu.memory_space<vmem>>, vector<16x64xf32>,
    %c1_23 = arith.constant 1 : index
    %c0_24 = arith.constant 0 : index
    %c4_25 = arith.constant 4 : index
    %32 = vector.load %arg0[%c1_23, %c0_24, %c4_25] : memref<2x18x72xf32, #tpu.memory_space<vmem>>, vector<1x18x64xf32>
    %33 = vector.shape_cast %32 : vector<1x18x64xf32> to vector<18x64xf32>
    %34 = vector.extract_strided_slice %33 {offsets = [0, 0], sizes = [16, 64], strides = [1, 1]} : vector<18x64xf32> to vector<16x64xf32>
    %c16_26 = arith.constant 16 : index
    %c64_27 = arith.constant 64 : index
    %35 = vector.load %arg4[%c16_26, %c64_27] : memref<32x576xf32, #tpu.memory_space<vmem>>, vector<16x64xf32>
    tpu.vector_store %arg4[%c16_26, %c64_27], %34 {strides = array<i32>} : memref<32x576xf32, #tpu.memory_space<vmem>>, vector<16x64xf32>,
    %36 = vector.extract_strided_slice %33 {offsets = [1, 0], sizes = [16, 64], strides = [1, 1]} : vector<18x64xf32> to vector<16x64xf32>
    %c16_28 = arith.constant 16 : index
    %c256_29 = arith.constant 256 : index
    %37 = vector.load %arg4[%c16_28, %c256_29] : memref<32x576xf32, #tpu.memory_space<vmem>>, vector<16x64xf32>
    tpu.vector_store %arg4[%c16_28, %c256_29], %36 {strides = array<i32>} : memref<32x576xf32, #tpu.memory_space<vmem>>, vector<16x64xf32>,
    %38 = vector.extract_strided_slice %33 {offsets = [2, 0], sizes = [16, 64], strides = [1, 1]} : vector<18x64xf32> to vector<16x64xf32>
    %c16_30 = arith.constant 16 : index
    %c448_31 = arith.constant 448 : index
    %39 = vector.load %arg4[%c16_30, %c448_31] : memref<32x576xf32, #tpu.memory_space<vmem>>, vector<16x64xf32>
    tpu.vector_store %arg4[%c16_30, %c448_31], %38 {strides = array<i32>} : memref<32x576xf32, #tpu.memory_space<vmem>>, vector<16x64xf32>,
    %c1_32 = arith.constant 1 : index
    %c0_33 = arith.constant 0 : index
    %c8_34 = arith.constant 8 : index
    %40 = vector.load %arg0[%c1_32, %c0_33, %c8_34] : memref<2x18x72xf32, #tpu.memory_space<vmem>>, vector<1x18x64xf32>
    %41 = vector.shape_cast %40 : vector<1x18x64xf32> to vector<18x64xf32>
    %42 = vector.extract_strided_slice %41 {offsets = [0, 0], sizes = [16, 64], strides = [1, 1]} : vector<18x64xf32> to vector<16x64xf32>
    %c16_35 = arith.constant 16 : index
    %c128_36 = arith.constant 128 : index
    %43 = vector.load %arg4[%c16_35, %c128_36] : memref<32x576xf32, #tpu.memory_space<vmem>>, vector<16x64xf32>
    tpu.vector_store %arg4[%c16_35, %c128_36], %42 {strides = array<i32>} : memref<32x576xf32, #tpu.memory_space<vmem>>, vector<16x64xf32>,
    %44 = vector.extract_strided_slice %41 {offsets = [1, 0], sizes = [16, 64], strides = [1, 1]} : vector<18x64xf32> to vector<16x64xf32>
    %c16_37 = arith.constant 16 : index
    %c320_38 = arith.constant 320 : index
    %45 = vector.load %arg4[%c16_37, %c320_38] : memref<32x576xf32, #tpu.memory_space<vmem>>, vector<16x64xf32>
    tpu.vector_store %arg4[%c16_37, %c320_38], %44 {strides = array<i32>} : memref<32x576xf32, #tpu.memory_space<vmem>>, vector<16x64xf32>,
    %46 = vector.extract_strided_slice %41 {offsets = [2, 0], sizes = [16, 64], strides = [1, 1]} : vector<18x64xf32> to vector<16x64xf32>
    %c16_39 = arith.constant 16 : index
    %c512_40 = arith.constant 512 : index
    %47 = vector.load %arg4[%c16_39, %c512_40] : memref<32x576xf32, #tpu.memory_space<vmem>>, vector<16x64xf32>
    tpu.vector_store %arg4[%c16_39, %c512_40], %46 {strides = array<i32>} : memref<32x576xf32, #tpu.memory_space<vmem>>, vector<16x64xf32>,
    %c0_41 = arith.constant 0 : index
    %c0_42 = arith.constant 0 : index
    %48 = vector.load %arg4[%c0_41, %c0_42] : memref<32x576xf32, #tpu.memory_space<vmem>>, vector<32x576xf32>
    %c0_43 = arith.constant 0 : index
    %c0_44 = arith.constant 0 : index
    %49 = vector.load %arg1[%c0_43, %c0_44] : memref<576x128xf32, #tpu.memory_space<vmem>>, vector<576x128xf32>
    %cst = arith.constant dense<0.000000e+00> : vector<32x128xf32>
    %50 = tpu.matmul %48, %49, %cst {dimension_numbers = #tpu.dot_dimension_numbers<[1], [0], [0], [1], [0, 0, 1, 1], [], []>} : vector<32x576xf32>, vector<576x128xf32>, vector<32x128xf32> -> vector<32x128xf32>
    %c0_45 = arith.constant 0 : index
    %c0_46 = arith.constant 0 : index
    %51 = vector.load %arg2[%c0_45, %c0_46] : memref<1x128xf32, #tpu.memory_space<vmem>>, vector<1x128xf32>
    %52 = vector.broadcast %51 : vector<1x128xf32> to vector<32x128xf32>
    %53 = arith.addf %50, %52 : vector<32x128xf32>
    %cst_47 = arith.constant 0.000000e+00 : f32
    %54 = vector.broadcast %cst_47 : f32 to vector<32x128xf32>
    %55 = arith.maximumf %53, %54 : vector<32x128xf32>
    %c0_48 = arith.constant 0 : index
    %c0_49 = arith.constant 0 : index
    %56 = vector.load %arg3[%c0_48, %c0_49] : memref<32x128xf32, #tpu.memory_space<vmem>>, vector<32x128xf32>
    tpu.vector_store %arg3[%c0_48, %c0_49], %55 {strides = array<i32>} : memref<32x128xf32, #tpu.memory_space<vmem>>, vector<32x128xf32>,
    return
  }
}

</mosaic_0001>

<bundles_post_ra>
// kernel: model_forward.1
= control target key start
LH: loop header
LB: loop body
LE: loop exit
PB: predicated region body
PF: predicated region fallthrough
CT: control target
= control target key end

     0   :  { %vm17_vm0 = vcmask 523264   ;;  %vm23_vm1 = vcmask 1046528   ;;  %s846_s18 = smov 120   ;;  %s847_s19 = smov 60   ;;  %vm38_vm2 = vcmask 1045504   ;;  %vm35_vm3 = vcmask 1048064   ;;  %s1294_s0 = inlined_call_operand.vmem [shape: f32[2,18,72], index: 0, kind: input, shape index: {}]   ;;  %s1295_s1 = inlined_call_operand.vmem [shape: f32[576,128], index: 1, kind: input, shape index: {}]   ;;  %s1296_s2 = inlined_call_operand.vmem [shape: f32[1,128], index: 2, kind: input, shape index: {}]   ;;  %s1297_s3 = inlined_call_operand.vmem [shape: f32[32,128], index: 3, kind: output, shape index: {}]  }
   0x1   :  { %v88_v0 = vld [vmem:[%s1294_s0] sm:$0xff]  ;;  %v877_v1 = vld [vmem:[%s1294_s0 + $0x8] sm:$0xff]  ;;  %v882_v2 = vld [vmem:[%s1294_s0 + $0x10] sm:$0x3]  ;;  %s848_s24 = smov 124   ;;  %s849_s25 = smov 64  }
   0x2   :  { %93 = vrot.lane.b32.xlu0 %v88_v0, %s846_s18  ;;  %v102_v3 = vrot.slane %v88_v0, 1  ;;  %v115_v4 = vrot.slane %v88_v0, 2  ;;  %53 = vrot.lane.b32.xlu1 %v88_v0, %s847_s19  ;;  %v887_v5 = vrot.slane %v877_v1, 1  ;;  %v892_v6 = vld [vmem:[%s1294_s0 + $0x18] sm:$0xff]  ;;  %18 = vst.msk [vmem:[#allocation2] sm:$0xff] %vm17_vm0, %v88_v0  ;;  %19 = vst.msk [vmem:[#allocation2 + $0x28] sm:$0xff] %vm17_vm0, %v877_v1 }
   0x3   :  { %v27_v7 = vrot.slane %v882_v2, 1  ;;  %v899_v8 = vrot.slane %v877_v1, 2  ;;  %132 = vst.msk [vmem:[#allocation2 + $0x50] sm:$0xff] %vm17_vm0, %v892_v6  ;;  %v908_v10 = vld [vmem:[%s1294_s0 + $0x20] sm:$0xff]  ;;  %v226_v12 = vrot.slane %v892_v6, 2  ;;  %v276_v17 = vld [vmem:[%s1295_s1 + $0x88] sm:$0xff] }
   0x4   :  { %v64_v9 = vsel %vm23_vm1, %v102_v3, %v887_v5  ;;  %133 = vst.msk [vmem:[#allocation2 + $0x78] sm:$0xff] %vm17_vm0, %v908_v10  ;;  %v922_v13 = vld [vmem:[%s1294_s0 + $0x10] sm:$0x3]  ;;  %v275_v14 = vld [vmem:[%s1295_s1 + $0x80] sm:$0xff]  ;;  %v932_v16 = vrot.slane %v908_v10, 2  ;;  %v260_v19 = vld [vmem:[%s1295_s1 + $0x8] sm:$0xff] }
   0x5   :  { %v912_v11 = vsel %vm38_vm2, %v115_v4, %v899_v8  ;;  %v28_v15 = vsel %vm23_vm1, %v887_v5, %v27_v7  ;;  %v259_v18 = vld [vmem:[%s1295_s1] sm:$0xff]  ;;  %v277_v20 = vld [vmem:[%s1295_s1 + $0x90] sm:$0xff]  ;;  %v278_v21 = vld [vmem:[%s1295_s1 + $0x98] sm:$0xff]  ;;  %v42_v23 = vrot.slane %v882_v2, 2  ;;  %v753_v28 = vpack.c.bf16 %v276_v17, %v275_v14  ;;  %s850_s20 = smov 56  }
   0x6   :  { %67 = vrot.lane.b32.xlu1 %v64_v9, %s848_s24  ;;  %29 = vrot.lane.b32.xlu0 %v64_v9, %s849_s25  ;;  %46 = vst.msk [vmem:[#allocation2 + $0x18] sm:$0xff] %vm17_vm0, %v912_v11  ;;  %v307_v22 = vld [vmem:[%s1295_s1 + $0x180] sm:$0xff]  ;;  %v955_v24 = vsel %vm38_vm2, %v226_v12, %v932_v16  ;;  %v308_v25 = vld [vmem:[%s1295_s1 + $0x188] sm:$0xff]  ;;  %v65_v31 = vrot.slane %v922_v13, 1  ;;  %v755_v33 = vpack.c.bf16 %v260_v19, %v259_v18  ;;  %v78_v51 = vrot.slane %v922_v13, 2 }
   0x7   :  { %v291_v26 = vld [vmem:[%s1295_s1 + $0x100] sm:$0xff]  ;;  %v292_v27 = vld [vmem:[%s1295_s1 + $0x108] sm:$0xff]  ;;  %v261_v29 = vld [vmem:[%s1295_s1 + $0x10] sm:$0xff]  ;;  %157 = vst.msk [vmem:[#allocation2 + $0x68] sm:$0xff] %vm17_vm0, %v955_v24  ;;  %v757_v34 = vpack.c.bf16 %v278_v21, %v277_v20  ;;  %754 = vmatprep.subr.bf16.mxu0 %v753_v28  ;;  %v785_v36 = vpack.c.bf16 %v308_v25, %v307_v22  ;;  %v43_v46 = vsel %vm38_vm2, %v899_v8, %v42_v23  ;;  %v213_v63 = vrot.slane %v892_v6, 1 }
   0x8   :  { %v262_v30 = vld [vmem:[%s1295_s1 + $0x18] sm:$0xff]  ;;  %v981_v32 = vld [vmem:[%s1294_s0 + $0x10] sm:$0x3]  ;;  %v787_v37 = vpack.c.bf16 %v292_v27, %v291_v26  ;;  %v279_v38 = vld [vmem:[%s1295_s1 + $0xa0] sm:$0xff]  ;;  %756 = vmatpush3.bf16.msra.mxu0 %v755_v33  ;;  %47 = vst.msk [vmem:[#allocation2 + $0x40] sm:$0xff] %vm17_vm0, %v43_v46  ;;  %v66_v49 = vsel %vm23_vm1, %v887_v5, %v65_v31  ;;  %v79_v4 = vsel %vm38_vm2, %v899_v8, %v78_v51  ;;  %v1056_v7 = vrot.slane %v908_v10, 1 }
   0x9   :  { %v309_v35 = vld [vmem:[%s1295_s1 + $0x190] sm:$0xff]  ;;  %v280_v39 = vld [vmem:[%s1295_s1 + $0xa8] sm:$0xff]  ;;  %v310_v40 = vld [vmem:[%s1295_s1 + $0x198] sm:$0xff]  ;;  %v759_v41 = vpack.c.bf16 %v262_v30, %v261_v29  ;;  %v105_v50 = vrot.slane %v981_v32, 1  ;;  %758 = vmatprep.subr.bf16.mxu0 %v757_v34  ;;  %786 = vmatprep.subr.bf16.mxu1 %v785_v36 }
   0xa   :  { %31 = vrot.lane.b32.xlu1 %v28_v15, %s849_s25  ;;  %80 = vrot.lane.b32.xlu0 %v912_v11, %s847_s19  ;;  %v263_v42 = vld [vmem:[%s1295_s1 + $0x20] sm:$0xff]  ;;  %v789_v43 = vpack.c.bf16 %v310_v40, %v309_v35  ;;  %v293_v44 = vld [vmem:[%s1295_s1 + $0x110] sm:$0xff]  ;;  %v761_v52 = vpack.c.bf16 %v280_v39, %v279_v38  ;;  %v1086_v22 = vsel %vm23_vm1, %v213_v63, %v1056_v7 }
   0xb   :  { %v294_v45 = vld [vmem:[%s1295_s1 + $0x118] sm:$0xff]  ;;  %v264_v47 = vld [vmem:[%s1295_s1 + $0x28] sm:$0xff]  ;;  %v311_v48 = vld [vmem:[%s1295_s1 + $0x1a0] sm:$0xff]  ;;  %788 = vmatpush3.bf16.msra.mxu1 %v787_v37  ;;  %v106_v3 = vsel %vm23_vm1, %v887_v5, %v105_v50 }
   0xc   :  { %v312_v53 = vld [vmem:[%s1295_s1 + $0x1a8] sm:$0xff]  ;;  %v791_v54 = vpack.c.bf16 %v294_v45, %v293_v44  ;;  %v281_v55 = vld [vmem:[%s1295_s1 + $0xb0] sm:$0xff]  ;;  %v282_v56 = vld [vmem:[%s1295_s1 + $0xb8] sm:$0xff]  ;;  %760 = vmatpush3.bf16.msra.mxu0 %v759_v41  ;;  %v763_v58 = vpack.c.bf16 %v264_v47, %v263_v42  ;;  %790 = vmatprep.subr.bf16.mxu1 %v789_v43 }
   0xd   :  { %v265_v57 = vld [vmem:[%s1295_s1 + $0x30] sm:$0xff]  ;;  %v266_v59 = vld [vmem:[%s1295_s1 + $0x38] sm:$0xff]  ;;  %v793_v60 = vpack.c.bf16 %v312_v53, %v311_v48  ;;  %v295_v61 = vld [vmem:[%s1295_s1 + $0x120] sm:$0xff]  ;;  %762 = vmatprep.subr.bf16.mxu0 %v761_v52 }
   0xe   :  { %95 = vrot.lane.b32.xlu1 %v877_v1, %s846_s18  ;;  %107 = vrot.lane.b32.xlu0 %v64_v9, %s850_s20  ;;  %v296_v62 = vld [vmem:[%s1295_s1 + $0x128] sm:$0xff]  ;;  %v313_v0 = vld [vmem:[%s1295_s1 + $0x1b0] sm:$0xff]  ;;  %v767_v14 = vpack.c.bf16 %v266_v59, %v265_v57 }
   0xf   :  { %v314_v2 = vld [vmem:[%s1295_s1 + $0x1b8] sm:$0xff]  ;;  %792 = vmatpush3.bf16.msra.mxu1 %v791_v54  ;;  %v795_v9 = vpack.c.bf16 %v296_v62, %v295_v61  ;;  %v283_v12 = vld [vmem:[%s1295_s1 + $0xc0] sm:$0xff]  ;;  %v284_v13 = vld [vmem:[%s1295_s1 + $0xc8] sm:$0xff] }
  0x10   :  { %v267_v5 = vld [vmem:[%s1295_s1 + $0x40] sm:$0xff]  ;;  %764 = vmatpush3.bf16.msra.mxu0 %v763_v58  ;;  %794 = vmatprep.subr.bf16.mxu1 %v793_v60  ;;  %v268_v15 = vld [vmem:[%s1295_s1 + $0x48] sm:$0xff]  ;;  %v797_v17 = vpack.c.bf16 %v314_v2, %v313_v0  ;;  %v297_v18 = vld [vmem:[%s1295_s1 + $0x130] sm:$0xff]  ;;  %v769_v25 = vpack.c.bf16 %v284_v13, %v283_v12 }
  0x11   :  { %v298_v19 = vld [vmem:[%s1295_s1 + $0x138] sm:$0xff]  ;;  %v315_v20 = vld [vmem:[%s1295_s1 + $0x1c0] sm:$0xff]  ;;  %v316_v21 = vld [vmem:[%s1295_s1 + $0x1c8] sm:$0xff]  ;;  %v771_v30 = vpack.c.bf16 %v268_v15, %v267_v5 }
  0x12   :  { %69 = vrot.lane.b32.xlu1 %v66_v49, %s848_s24  ;;  %55 = vrot.lane.b32.xlu0 %v877_v1, %s847_s19  ;;  %v765_v1 = vpack.c.bf16 %v282_v56, %v281_v55  ;;  %v619_v23 = vld [vmem:[%s1294_s0 + $0x28] sm:$0x3]  ;;  %v799_v26 = vpack.c.bf16 %v298_v19, %v297_v18  ;;  %v285_v27 = vld [vmem:[%s1295_s1 + $0xd0] sm:$0xff]  ;;  %v801_v33 = vpack.c.bf16 %v316_v21, %v315_v20 }
  0x13   :  { %796 = vmatpush3.bf16.msra.mxu1 %v795_v9  ;;  %v286_v28 = vld [vmem:[%s1295_s1 + $0xd8] sm:$0xff]  ;;  %v269_v29 = vld [vmem:[%s1295_s1 + $0x50] sm:$0xff]  ;;  %v299_v34 = vld [vmem:[%s1295_s1 + $0x140] sm:$0xff]  ;;  %v140_v38 = vrot.slane %v619_v23, 1  ;;  %v153_v39 = vrot.slane %v619_v23, 2 }
  0x14   :  { %766 = vmatprep.subr.bf16.mxu0 %v765_v1  ;;  %798 = vmatprep.subr.bf16.mxu1 %v797_v17  ;;  %v270_v31 = vld [vmem:[%s1295_s1 + $0x58] sm:$0xff]  ;;  %v300_v35 = vld [vmem:[%s1295_s1 + $0x148] sm:$0xff]  ;;  %v317_v36 = vld [vmem:[%s1295_s1 + $0x1d0] sm:$0xff]  ;;  %v773_v40 = vpack.c.bf16 %v286_v28, %v285_v27  ;;  %v118_v27 = vrot.slane %v981_v32, 2 }
  0x15   :  { %768 = vmatpush3.bf16.msra.mxu0 %v767_v14  ;;  %v318_v37 = vld [vmem:[%s1295_s1 + $0x1d8] sm:$0xff]  ;;  %v803_v41 = vpack.c.bf16 %v300_v35, %v299_v34  ;;  %v287_v42 = vld [vmem:[%s1295_s1 + $0xe0] sm:$0xff]  ;;  %v288_v43 = vld [vmem:[%s1295_s1 + $0xe8] sm:$0xff]  ;;  %v775_v45 = vpack.c.bf16 %v270_v31, %v269_v29  ;;  %v141_v52 = vsel %vm23_vm1, %v1056_v7, %v140_v38 }
  0x16   :  { %109 = vrot.lane.b32.xlu1 %v106_v3, %s850_s20  ;;  %82 = vrot.lane.b32.xlu0 %v79_v4, %s847_s19  ;;  %v271_v44 = vld [vmem:[%s1295_s1 + $0x60] sm:$0xff]  ;;  %v272_v46 = vld [vmem:[%s1295_s1 + $0x68] sm:$0xff]  ;;  %v805_v47 = vpack.c.bf16 %v318_v37, %v317_v36  ;;  %v777_v54 = vpack.c.bf16 %v288_v43, %v287_v42 }
  0x17   :  { %770 = vmatprep.subr.bf16.mxu0 %v769_v25  ;;  %800 = vmatpush3.bf16.msra.mxu1 %v799_v26  ;;  %v301_v48 = vld [vmem:[%s1295_s1 + $0x150] sm:$0xff]  ;;  %v302_v49 = vld [vmem:[%s1295_s1 + $0x158] sm:$0xff]  ;;  %v319_v50 = vld [vmem:[%s1295_s1 + $0x1e0] sm:$0xff]  ;;  %v779_v59 = vpack.c.bf16 %v272_v46, %v271_v44 }
  0x18   :  { %802 = vmatprep.subr.bf16.mxu1 %v801_v33  ;;  %v320_v51 = vld [vmem:[%s1295_s1 + $0x1e8] sm:$0xff]  ;;  %v807_v55 = vpack.c.bf16 %v302_v49, %v301_v48  ;;  %v289_v56 = vld [vmem:[%s1295_s1 + $0xf0] sm:$0xff]  ;;  %v290_v57 = vld [vmem:[%s1295_s1 + $0xf8] sm:$0xff] }
  0x19   :  { %772 = vmatpush3.bf16.msra.mxu0 %v771_v30  ;;  %v622_v53 = vld [vmem:[%s1294_s0 + $0x28] sm:$0x3]  ;;  %v273_v58 = vld [vmem:[%s1295_s1 + $0x70] sm:$0xff]  ;;  %v274_v60 = vld [vmem:[%s1295_s1 + $0x78] sm:$0xff]  ;;  %v809_v61 = vpack.c.bf16 %v320_v51, %v319_v50  ;;  %v781_v4 = vpack.c.bf16 %v290_v57, %v289_v56 }
  0x1a   :  { %204 = vrot.lane.b32.xlu1 %v892_v6, %s846_s18  ;;  %142 = vrot.lane.b32.xlu0 %v1086_v22, %s849_s25  ;;  %v303_v62 = vld [vmem:[%s1295_s1 + $0x160] sm:$0xff]  ;;  %v304_v63 = vld [vmem:[%s1295_s1 + $0x168] sm:$0xff]  ;;  %v176_v3 = vrot.slane %v622_v53, 1  ;;  %v783_v5 = vpack.c.bf16 %v274_v60, %v273_v58  ;;  %v189_v20 = vrot.slane %v622_v53, 2 }
  0x1b   :  { %774 = vmatprep.subr.bf16.mxu0 %v773_v40  ;;  %804 = vmatpush3.bf16.msra.mxu1 %v803_v41  ;;  %v321_v0 = vld [vmem:[%s1295_s1 + $0x1f0] sm:$0xff]  ;;  %v322_v2 = vld [vmem:[%s1295_s1 + $0x1f8] sm:$0xff]  ;;  %v625_v1 = vld [vmem:[%s1294_s0 + $0x28] sm:$0x3]  ;;  %v811_v9 = vpack.c.bf16 %v304_v63, %v303_v62 }
  0x1c   :  { %806 = vmatprep.subr.bf16.mxu1 %v805_v47  ;;  %v323_v12 = vld [vmem:[%s1295_s1 + $0x200] sm:$0xff]  ;;  %v324_v13 = vld [vmem:[%s1295_s1 + $0x208] sm:$0xff]  ;;  %v813_v14 = vpack.c.bf16 %v322_v2, %v321_v0  ;;  %v305_v15 = vld [vmem:[%s1295_s1 + $0x170] sm:$0xff]  ;;  %v177_v18 = vsel %vm23_vm1, %v1056_v7, %v176_v3  ;;  %v216_v19 = vrot.slane %v625_v1, 1  ;;  %v190_v25 = vsel %vm38_vm2, %v932_v16, %v189_v20 }
  0x1d   :  { %776 = vmatpush3.bf16.msra.mxu0 %v775_v45  ;;  %v306_v17 = vld [vmem:[%s1295_s1 + $0x178] sm:$0xff]  ;;  %v1203_v21 = vpack.c.bf16 %v324_v13, %v323_v12  ;;  %v229_v26 = vrot.slane %v625_v1, 2  ;;  %v327_v37 = vld [vmem:[%s1295_s1 + $0x220] sm:$0xff]  ;;  %v328_v38 = vld [vmem:[%s1295_s1 + $0x228] sm:$0xff] }
  0x1e   :  { %178 = vrot.lane.b32.xlu1 %v1086_v22, %s848_s24  ;;  %164 = vrot.lane.b32.xlu0 %v892_v6, %s847_s19  ;;  %v154_v6 = vsel %vm38_vm2, %v932_v16, %v153_v39  ;;  %v815_v23 = vpack.c.bf16 %v306_v17, %v305_v15  ;;  %v326_v30 = vld [vmem:[%s1295_s1 + $0x218] sm:$0xff]  ;;  %v825_v42 = vpack.c.bf16 %v328_v38, %v327_v37  ;;  %v329_v43 = vld [vmem:[%s1295_s1 + $0x230] sm:$0xff] }
  0x1f   :  { %158 = vst.msk [vmem:[#allocation2 + $0x90] sm:$0xff] %vm17_vm0, %v154_v6  ;;  %778 = vmatprep.subr.bf16.mxu0 %v777_v54  ;;  %808 = vmatpush3.bf16.msra.mxu1 %v807_v55  ;;  %v330_v44 = vld [vmem:[%s1295_s1 + $0x238] sm:$0xff] }
  0x20   :  { %810 = vmatprep.subr.bf16.mxu1 %v809_v61  ;;  %v829_v49 = vpack.c.bf16 %v330_v44, %v329_v43 }
  0x21   :  { %780 = vmatpush3.bf16.msra.mxu0 %v779_v59 }
  0x22   :  { %144 = vrot.lane.b32.xlu1 %v141_v52, %s849_s25  ;;  %191 = vrot.lane.b32.xlu0 %v955_v24, %s847_s19 }
  0x23   :  { %782 = vmatprep.subr.bf16.mxu0 %v781_v4  ;;  %812 = vmatpush3.bf16.msra.mxu1 %v811_v9 }
  0x24   :  { %814 = vmatprep.subr.bf16.mxu1 %v813_v14 }
  0x25   :  { %784 = vmatpush3.bf16.msra.mxu0 %v783_v5 }
  0x26   :  { %206 = vrot.lane.b32.xlu1 %v908_v10, %s846_s18  ;;  %218 = vrot.lane.b32.xlu0 %v1086_v22, %s850_s20  ;;  %v217_v22 = vsel %vm23_vm1, %v1056_v7, %v216_v19  ;;  %v119_v7 = vsel %vm38_vm2, %v899_v8, %v118_v27  ;;  %v325_v8 = vld [vmem:[%s1295_s1 + $0x210] sm:$0xff] }
  0x27   :  { %818 = vmatprep.subr.bf16.mxu0 %v1203_v21  ;;  %816 = vmatpush3.bf16.msra.mxu1 %v815_v23  ;;  %v821_v35 = vpack.c.bf16 %v326_v30, %v325_v8 }
  0x28   :  { %833 = vmatprep.subr.bf16.mxu1 %v1203_v21 }
  0x2a   :  { %180 = vrot.lane.b32.xlu1 %v177_v18, %s848_s24  ;;  %166 = vrot.lane.b32.xlu0 %v908_v10, %s847_s19  ;;  %v230_v10 = vsel %vm38_vm2, %v932_v16, %v229_v26  ;;  %v626_v26 = vld [vmem:[%s1296_s2] ss:$0 sm:$0xff] }
  0x2e   :  { %220 = vrot.lane.b32.xlu1 %v217_v22, %s850_s20  ;;  %193 = vrot.lane.b32.xlu0 %v190_v25, %s847_s19 }
  0x32   :  { %231 = vrot.lane.b32.xlu1 %v955_v24, %s846_s18  ;;  %120 = vrot.lane.b32.xlu0 %v912_v11, %s846_s18 }
  0x36   :  { %233 = vrot.lane.b32.xlu1 %v230_v10, %s846_s18  ;;  %122 = vrot.lane.b32.xlu0 %v119_v7, %s846_s18 }
  0x74   :  { %v94_v28 = vpop.permute.xlu0 %93  ;;  %v54_v29 = vpop.permute.xlu1 %53 }
  0x75   :  { %59 = vst.msk [vmem:[#allocation2] sm:$0xff] %vm35_vm3, %v54_v29 }
  0x78   :  { %v68_v32 = vpop.permute.xlu1 %67  ;;  %v30_v24 = vpop.permute.xlu0 %29 }
  0x79   :  { %73 = vst.msk [vmem:[#allocation2 + $0x10] sm:$0xff] %vm17_vm0, %v68_v32 }
  0x7a   :  { %36 = vst.msk [vmem:[#allocation2 + $0x8] sm:$0xff] %vm35_vm3, %v30_v24 }
  0x7b   :  { %99 = vst.msk [vmem:[#allocation2 + $0x8] sm:$0xff] %vm17_vm0, %v94_v28 }
  0x7c   :  { %v32_v11 = vpop.permute.xlu1 %31  ;;  %v81_v16 = vpop.permute.xlu0 %80  ;;  %v239_v36 = vld [vmem:[#allocation2] sm:$0xff] }
  0x7d   :  { %37 = vst.msk [vmem:[#allocation2 + $0x30] sm:$0xff] %vm35_vm3, %v32_v11  ;;  %86 = vst.msk [vmem:[#allocation2 + $0x18] sm:$0xff] %vm35_vm3, %v81_v16 }
  0x80   :  { %v96_v31 = vpop.permute.xlu1 %95  ;;  %v108_v33 = vpop.permute.xlu0 %107 }
  0x81   :  { %100 = vst.msk [vmem:[#allocation2 + $0x30] sm:$0xff] %vm17_vm0, %v96_v31 }
  0x82   :  { %113 = vst.msk [vmem:[#allocation2 + $0x10] sm:$0xff] %vm35_vm3, %v108_v33  ;;  %v240_v34 = vld [vmem:[#allocation2 + $0x8] sm:$0xff] }
  0x83   :  { %414 = vmatprep.mubr.f32.mxu0 %v240_v34 }
  0x84   :  { %415 = vmatmul.mubr.f32.vlgmr.msra.gmra.mrb[0].mxu0 %v239_v36  ;;  %v70_v39 = vpop.permute.xlu1 %69  ;;  %v56_v40 = vpop.permute.xlu0 %55  ;;  %v242_v41 = vld [vmem:[#allocation2 + $0x18] sm:$0xff] }
  0x85   :  { %820 = vmatpush3.bf16.msra.mxu0 %v1203_v21  ;;  %74 = vst.msk [vmem:[#allocation2 + $0x38] sm:$0xff] %vm17_vm0, %v70_v39  ;;  %499 = vmatprep.mubr.f32.mxu1 %v242_v41 }
  0x86   :  { %60 = vst.msk [vmem:[#allocation2 + $0x28] sm:$0xff] %vm35_vm3, %v56_v40  ;;  %822 = vmatprep.subr.bf16.mxu0 %v821_v35 }
  0x88   :  { %v110_v45 = vpop.permute.xlu1 %109  ;;  %v83_v46 = vpop.permute.xlu0 %82  ;;  %v245_v47 = vld [vmem:[#allocation2 + $0x30] sm:$0xff] }
  0x89   :  { %v241_v48 = vld [vmem:[#allocation2 + $0x10] sm:$0xff]  ;;  %824 = vmatpush3.bf16.msra.mxu0 %v821_v35  ;;  %114 = vst.msk [vmem:[#allocation2 + $0x38] sm:$0xff] %vm35_vm3, %v110_v45  ;;  %87 = vst.msk [vmem:[#allocation2 + $0x40] sm:$0xff] %vm35_vm3, %v83_v46  ;;  %419 = vmatprep.mubr.f32.mxu0 %v245_v47 }
  0x8a   :  { %500 = vmatmul.mubr.f32.vlgmr.msra.gmra.mrb[0].mxu1 %v241_v48  ;;  %826 = vmatprep.subr.bf16.mxu0 %v825_v42 }
  0x8b   :  { %837 = vmatpush3.bf16.msra.mxu1 %v1203_v21 }
  0x8c   :  { %834 = vmatprep.subr.bf16.mxu1 %v821_v35  ;;  %v205_v50 = vpop.permute.xlu1 %204  ;;  %v143_v51 = vpop.permute.xlu0 %142 }
  0x8d   :  { %v244_v52 = vld [vmem:[#allocation2 + $0x28] sm:$0xff]  ;;  %828 = vmatpush3.bf16.msra.mxu0 %v825_v42  ;;  %148 = vst.msk [vmem:[#allocation2 + $0x58] sm:$0xff] %vm35_vm3, %v143_v51 }
  0x8e   :  { %420 = vmatmul.mubr.f32.gmra.mrb[2].mxu0 %v244_v52  ;;  %830 = vmatprep.subr.bf16.mxu0 %v829_v49  ;;  %210 = vst.msk [vmem:[#allocation2 + $0x58] sm:$0xff] %vm17_vm0, %v205_v50 }
  0x8f   :  { %838 = vmatpush3.bf16.msra.mxu1 %v821_v35 }
  0x90   :  { %835 = vmatprep.subr.bf16.mxu1 %v825_v42  ;;  %v179_v53 = vpop.permute.xlu1 %178  ;;  %v165_v54 = vpop.permute.xlu0 %164  ;;  %v247_v6 = vld [vmem:[#allocation2 + $0x40] sm:$0xff]  ;;  %v246_v55 = vld [vmem:[#allocation2 + $0x38] sm:$0xff] }
  0x91   :  { %832 = vmatpush3.bf16.msra.mxu0 %v829_v49  ;;  %184 = vst.msk [vmem:[#allocation2 + $0x60] sm:$0xff] %vm17_vm0, %v179_v53  ;;  %504 = vmatprep.mubr.f32.mxu1 %v247_v6 }
  0x92   :  { %170 = vst.msk [vmem:[#allocation2 + $0x50] sm:$0xff] %vm35_vm3, %v165_v54  ;;  %505 = vmatmul.mubr.f32.gmra.mrb[2].mxu1 %v246_v55 }
  0x93   :  { %839 = vmatpush3.bf16.msra.mxu1 %v825_v42 }
  0x94   :  { %v145_v56 = vpop.permute.xlu1 %144  ;;  %v192_v57 = vpop.permute.xlu0 %191  ;;  %836 = vmatprep.subr.bf16.mxu1 %v829_v49 }
  0x95   :  { %149 = vst.msk [vmem:[#allocation2 + $0x80] sm:$0xff] %vm35_vm3, %v145_v56  ;;  %197 = vst.msk [vmem:[#allocation2 + $0x68] sm:$0xff] %vm35_vm3, %v192_v57  ;;  %v250_v58 = vld [vmem:[#allocation2 + $0x58] sm:$0xff] }
  0x96   :  { %424 = vmatprep.mubr.f32.mxu0 %v250_v58 }
  0x97   :  { %840 = vmatpush3.bf16.msra.mxu1 %v829_v49 }
  0x98   :  { %v207_v59 = vpop.permute.xlu1 %206  ;;  %v219_v60 = vpop.permute.xlu0 %218 }
  0x99   :  { %v249_v61 = vld [vmem:[#allocation2 + $0x50] sm:$0xff]  ;;  %211 = vst.msk [vmem:[#allocation2 + $0x80] sm:$0xff] %vm17_vm0, %v207_v59 }
  0x9a   :  { %224 = vst.msk [vmem:[#allocation2 + $0x60] sm:$0xff] %vm35_vm3, %v219_v60  ;;  %425 = vmatmul.mubr.f32.gmra.mrb[4].mxu0 %v249_v61 }
  0x9c   :  { %v181_v62 = vpop.permute.xlu1 %180  ;;  %v167_v63 = vpop.permute.xlu0 %166  ;;  %v252_v0 = vld [vmem:[#allocation2 + $0x68] sm:$0xff] }
  0x9d   :  { %185 = vst.msk [vmem:[#allocation2 + $0x88] sm:$0xff] %vm17_vm0, %v181_v62  ;;  %509 = vmatprep.mubr.f32.mxu1 %v252_v0 }
  0x9e   :  { %171 = vst.msk [vmem:[#allocation2 + $0x78] sm:$0xff] %vm35_vm3, %v167_v63 }
  0xa0   :  { %v221_v2 = vpop.permute.xlu1 %220  ;;  %v194_v3 = vpop.permute.xlu0 %193  ;;  %v255_v4 = vld [vmem:[#allocation2 + $0x80] sm:$0xff] }
  0xa1   :  { %v251_v1 = vld [vmem:[#allocation2 + $0x60] sm:$0xff]  ;;  %225 = vst.msk [vmem:[#allocation2 + $0x88] sm:$0xff] %vm35_vm3, %v221_v2  ;;  %198 = vst.msk [vmem:[#allocation2 + $0x90] sm:$0xff] %vm35_vm3, %v194_v3  ;;  %429 = vmatprep.mubr.f32.mxu0 %v255_v4 }
  0xa2   :  { %510 = vmatmul.mubr.f32.gmra.mrb[4].mxu1 %v251_v1 }
  0xa4   :  { %v232_v9 = vpop.permute.xlu1 %231  ;;  %v121_v12 = vpop.permute.xlu0 %120 }
  0xa5   :  { %v254_v13 = vld [vmem:[#allocation2 + $0x78] sm:$0xff]  ;;  %237 = vst.msk [vmem:[#allocation2 + $0x70] sm:$0xff] %vm17_vm0, %v232_v9  ;;  %126 = vst.msk [vmem:[#allocation2 + $0x20] sm:$0xff] %vm17_vm0, %v121_v12 }
  0xa6   :  { %430 = vmatmul.mubr.f32.gmra.mrb[6].mxu0 %v254_v13 }
  0xa8   :  { %v234_v5 = vpop.permute.xlu1 %233  ;;  %v123_v14 = vpop.permute.xlu0 %122  ;;  %v257_v15 = vld [vmem:[#allocation2 + $0x90] sm:$0xff]  ;;  %v256_v17 = vld [vmem:[#allocation2 + $0x88] sm:$0xff] }
  0xa9   :  { %238 = vst.msk [vmem:[#allocation2 + $0x98] sm:$0xff] %vm17_vm0, %v234_v5  ;;  %127 = vst.msk [vmem:[#allocation2 + $0x48] sm:$0xff] %vm17_vm0, %v123_v14  ;;  %514 = vmatprep.mubr.f32.mxu1 %v257_v15 }
  0xaa   :  { %515 = vmatmul.mubr.f32.gmra.mrb[6].mxu1 %v256_v17 }
  0xac   :  { %v243_v18 = vld [vmem:[#allocation2 + $0x20] sm:$0xff]  ;;  %v253_v19 = vld [vmem:[#allocation2 + $0x70] sm:$0xff] }
  0xad   :  { %747 = vmatprep.mubr.msk.f32.mxu0 %vm17_vm0, %v243_v18  ;;  %750 = vmatprep.mubr.msk.f32.mxu1 %vm17_vm0, %v253_v19 }
  0xb0   :  { %v248_v20 = vld [vmem:[#allocation2 + $0x48] sm:$0xff]  ;;  %v258_v21 = vld [vmem:[#allocation2 + $0x98] sm:$0xff] }
  0xb1   :  { %748 = vmatmul.mubr.msk.f32.vlgmr.msra.gmra.mrb[8].mxu0 %vm17_vm0, %v248_v20  ;;  %751 = vmatmul.mubr.msk.f32.vlgmr.msra.gmra.mrb[8].mxu1 %vm17_vm0, %v258_v21 }
 0x157   :  { %v663_v23 = vpop.f32.mrb[0].mxu0 }
 0x158   :  { %v664_v22 = vpop.f32.mrb[1].mxu0 }
 0x159   :  { %v665_v25 = vadd.f32 %v664_v22, %v663_v23 }
 0x15b   :  { %v417_v7 = vadd.f32 %v665_v25, %v626_v26 }
 0x15d   :  { %v707_v27 = vpop.f32.mrb[0].mxu1 }
 0x15e   :  { %v708_v10 = vpop.f32.mrb[1].mxu1 }
 0x15f   :  { %v709_v28 = vadd.f32 %v708_v10, %v707_v27 }
 0x161   :  { %v666_v29 = vpop.f32.mrb[2].mxu0  ;;  %v502_v32 = vadd.f32 %v709_v28, %v417_v7 }
 0x162   :  { %v667_v24 = vpop.f32.mrb[3].mxu0 }
 0x163   :  { %v668_v11 = vadd.f32 %v667_v24, %v666_v29 }
 0x165   :  { %v710_v16 = vpop.f32.mrb[2].mxu1  ;;  %v422_v30 = vadd.f32 %v668_v11, %v626_v26 }
 0x166   :  { %v711_v8 = vpop.f32.mrb[3].mxu1 }
 0x167   :  { %v712_v31 = vadd.f32 %v711_v8, %v710_v16 }
 0x169   :  { %v507_v33 = vadd.f32 %v712_v31, %v422_v30 }
 0x16d   :  { %v669_v34 = vpop.f32.mrb[4].mxu0 }
 0x16e   :  { %v670_v35 = vpop.f32.mrb[5].mxu0 }
 0x16f   :  { %v671_v36 = vadd.f32 %v670_v35, %v669_v34 }
 0x171   :  { %v427_v39 = vadd.f32 %v671_v36, %v626_v26 }
 0x175   :  { %v713_v37 = vpop.f32.mrb[4].mxu1 }
 0x176   :  { %v714_v38 = vpop.f32.mrb[5].mxu1 }
 0x177   :  { %v715_v40 = vadd.f32 %v714_v38, %v713_v37 }
 0x179   :  { %v672_v41 = vpop.f32.mrb[6].mxu0  ;;  %v512_v42 = vadd.f32 %v715_v40, %v427_v39 }
 0x17a   :  { %v673_v43 = vpop.f32.mrb[7].mxu0 }
 0x17b   :  { %v674_v44 = vadd.f32 %v673_v43, %v672_v41 }
 0x17d   :  { %v716_v45 = vpop.f32.mrb[6].mxu1  ;;  %v432_v47 = vadd.f32 %v674_v44, %v626_v26 }
 0x17e   :  { %v717_v46 = vpop.f32.mrb[7].mxu1 }
 0x17f   :  { %v718_v48 = vadd.f32 %v717_v46, %v716_v45 }
 0x181   :  { %v517_v49 = vadd.f32 %v718_v48, %v432_v47 }
 0x184   :  { %v749_v50 = vpop.f32.mrb[8].mxu0  ;;  %v752_v51 = vpop.f32.mrb[8].mxu1 }
 0x185   :  { %v592_v52 = vadd.f32 %v749_v50, %v507_v33  ;;  %v602_v53 = vadd.f32 %v752_v51, %v517_v49  ;;  %v586_v54 = vpop.f32.mrb[9].mxu0  ;;  %v596_v6 = vpop.f32.mrb[9].mxu1 }
 0x186   :  { %v587_v55 = vadd.f32 %v586_v54, %v502_v32  ;;  %v597_v56 = vadd.f32 %v596_v6, %v512_v42 }
 0x187   :  { %v606_v57 = vmax.f32 %v592_v52, 0.0  ;;  %v608_v58 = vmax.f32 %v602_v53, 0.0 }
 0x188   :  { %v605_v59 = vmax.f32 %v587_v55, 0.0  ;;  %v607_v60 = vmax.f32 %v597_v56, 0.0 }
 0x189   :  { %610 = vst [vmem:[%s1297_s3 + $0x8] sm:$0xff] %v606_v57  ;;  %612 = vst [vmem:[%s1297_s3 + $0x18] sm:$0xff] %v608_v58 }
 0x18a   :  { %609 = vst [vmem:[%s1297_s3] sm:$0xff] %v605_v59  ;;  %611 = vst [vmem:[%s1297_s3 + $0x10] sm:$0xff] %v607_v60 }

</bundles_post_ra>
